<compile_context>
chip_gen: v7x
topology: tpu7x:2x2x1
jax: 0.10.0
libtpu: 0.0.40
codegen_flags: <defaults>
</compile_context>

<pallas_src>
import jax
import jax.numpy as jnp
from jax.experimental import pallas as pl
from jax.experimental.pallas import tpu as pltpu


def _make_kernel(KH, KW, Wp, L, inv_count, eps):
    """Builds the fused conv + instance-norm + ReLU kernel for fixed geometry."""

    def kernel(x_ref, w_ref, b_ref, m_ref, o_ref):
        # x_ref: (1, Cin, Lf)      padded, spatially-flattened input (one image)
        # w_ref: (KH*KW, COT, Cin) per-tap weight matrices
        # b_ref: (COT, 1)          bias (f32)
        # m_ref: (1, L)            f32 valid-position mask over the flat plane
        # o_ref: (1, COT, L)       lane-dense output (channels x flat-spatial)
        cot = o_ref.shape[1]

        # Shifted-window conv: each tap (kh, kw) is a constant lane shift of the
        # flattened input, so the whole conv is KH*KW accumulated MXU matmuls
        # with no im2col in HBM or VMEM.
        acc = jnp.zeros((cot, L), jnp.float32)
        for kh in range(KH):
            for kw in range(KW):
                shift = kh * Wp + kw
                xs = x_ref[0, :, shift:shift + L]          # (Cin, L), static slice
                acc = acc + jnp.dot(w_ref[kh * KW + kw], xs,
                                    preferred_element_type=jnp.float32)
        y = acc + b_ref[...]                               # (COT, L) f32

        # InstanceNorm2d(affine=False): per-channel mean/var over the valid
        # spatial positions (mask kills the row-overlap columns of the
        # flattened plane).  Single pass: masked sum and sum-of-squares.
        m = m_ref[...]                                     # (1, L)
        ym = y * m
        s1 = jnp.sum(ym, axis=1, keepdims=True)            # (COT, 1)
        s2 = jnp.sum(ym * y, axis=1, keepdims=True)        # masked sum(y^2)
        mean = s1 * inv_count
        var = s2 * inv_count - mean * mean                 # biased variance
        o = (y - mean) * jax.lax.rsqrt(var + eps)
        o_ref[0] = jnp.maximum(o, 0.0).astype(o_ref.dtype) # ReLU

    return kernel


def relu_ins_conv2d(x_nchw, weight, bias, *, stride, padding,
                    compute_dtype=jnp.float32):
    """x_nchw: (N, Cin, H, W); weight: (Cout, Cin, KH, KW); bias: (Cout,)."""
    N, Cin, H, W = x_nchw.shape
    Cout, _, KH, KW = weight.shape
    s = stride

    Hp, Wp = H + 2 * padding, W + 2 * padding
    OH = (Hp - KH) // s + 1
    OW = (Wp - KW) // s + 1
    OH1 = Hp - KH + 1                 # stride-1 row extent computed in-kernel
    L = OH1 * Wp                      # flattened (extended) output length, lane axis
    Lf = Hp * Wp + (KW - 1)           # flattened input length (+ tail so every tap fits)

    # ---- glue: all NCHW, no layout transposes ----
    x_pad = jnp.pad(x_nchw, ((0, 0), (0, 0),
                             (padding, padding), (padding, padding)))
    x_flat = x_pad.reshape(N, Cin, Hp * Wp)
    x_flat = jnp.pad(x_flat, ((0, 0), (0, 0), (0, KW - 1)))
    x_flat = x_flat.astype(compute_dtype)

    # weight (Cout, Cin, KH, KW) -> (KH*KW, Cout, Cin), one (Cout, Cin) per tap.
    w_taps = jnp.transpose(weight, (2, 3, 0, 1)).reshape(KH * KW, Cout, Cin)
    w_taps = w_taps.astype(compute_dtype)
    b_col = bias.reshape(Cout, 1).astype(jnp.float32)

    # Valid-position mask over the flattened plane: position q = row*Wp + col is
    # a real output iff (row, col) lies on the stride grid inside (OH, OW).
    q = jnp.arange(L, dtype=jnp.int32)
    row, col = q // Wp, q % Wp
    mask = ((row % s == 0) & (row // s < OH) &
            (col % s == 0) & (col // s < OW)).astype(jnp.float32).reshape(1, L)

    # Optional Cout tiling -> second "parallel" grid axis (helps v7x dual-TC
    # when N is small).  Degenerates to a single tile at small Cout.
    cot = Cout
    for cand in (64, 32, 16, 8):
        if Cout % cand == 0 and Cout >= 2 * cand:
            cot = cand
            break
    n_ct = Cout // cot

    kernel = _make_kernel(KH, KW, Wp, L, 1.0 / float(OH * OW), 1e-5)

    out = pl.pallas_call(
        kernel,
        out_shape=jax.ShapeDtypeStruct((N, Cout, L), jnp.float32),
        grid_spec=pltpu.PrefetchScalarGridSpec(
            num_scalar_prefetch=0,
            grid=(N, n_ct),
            in_specs=[
                pl.BlockSpec((1, Cin, Lf), lambda n, c: (n, 0, 0)),
                pl.BlockSpec((KH * KW, cot, Cin), lambda n, c: (0, c, 0)),
                pl.BlockSpec((cot, 1), lambda n, c: (c, 0)),
                pl.BlockSpec((1, L), lambda n, c: (0, 0)),
            ],
            out_specs=pl.BlockSpec((1, cot, L), lambda n, c: (n, c, 0)),
        ),
        compiler_params=pltpu.CompilerParams(
            dimension_semantics=("parallel", "parallel")),
    )(x_flat, w_taps, b_col, mask)

    # (N, Cout, L) -> (N, Cout, OH1, Wp) -> pick the valid stride grid -> NCHW.
    out = out.reshape(N, Cout, OH1, Wp)
    out = out[:, :, 0:(OH - 1) * s + 1:s, 0:(OW - 1) * s + 1:s]
    return out


def _reference(x_nchw, weight, bias, *, stride, padding):
    """Pure-JAX reference of Conv2d + InstanceNorm2d(affine=False) + ReLU."""
    y = jax.lax.conv_general_dilated(
        x_nchw, weight, window_strides=(stride, stride),
        padding=((padding, padding), (padding, padding)),
        dimension_numbers=("NCHW", "OIHW", "NCHW"))
    y = y + bias.reshape(1, -1, 1, 1)
    mean = jnp.mean(y, axis=(2, 3), keepdims=True)
    var = jnp.mean((y - mean) ** 2, axis=(2, 3), keepdims=True)
    y = (y - mean) * jax.lax.rsqrt(var + 1e-5)
    return jnp.maximum(y, 0.0)


if __name__ == "__main__":
    # Module config (small, consistent with the forward):
    n_in, n_out, kernel_size, stride, padding = 4, 8, 3, 1, 1
    N, H, W = 2, 16, 16

    key = jax.random.PRNGKey(0)
    k1, k2, k3 = jax.random.split(key, 3)

    x = jax.random.normal(k1, (N, n_in, H, W), dtype=jnp.float32)
    # gaussian_weights_init: Conv weight ~ N(0, 0.02); small deterministic bias.
    weight = 0.02 * jax.random.normal(
        k2, (n_out, n_in, kernel_size, kernel_size), dtype=jnp.float32)
    bias = 0.01 * jax.random.normal(k3, (n_out,), dtype=jnp.float32)

    ref = _reference(x, weight, bias, stride=stride, padding=padding)

    # f32 path: tight check against the conv reference.
    out_f32 = jax.block_until_ready(
        relu_ins_conv2d(x, weight, bias, stride=stride, padding=padding,
                        compute_dtype=jnp.float32))
    assert out_f32.shape == (N, n_out, H, W), out_f32.shape
    assert jnp.allclose(out_f32, ref, atol=1e-4, rtol=1e-4), \
        float(jnp.max(jnp.abs(out_f32 - ref)))

    # bf16 matmul-input path (v6e/v7x fast path): f32 accumulation + f32 norm,
    # looser tolerance reflecting bf16 input rounding.
    out_bf16 = jax.block_until_ready(
        relu_ins_conv2d(x, weight, bias, stride=stride, padding=padding,
                        compute_dtype=jnp.bfloat16))
    assert out_bf16.shape == (N, n_out, H, W), out_bf16.shape
    assert jnp.allclose(out_bf16, ref, atol=5e-2, rtol=5e-2), \
        float(jnp.max(jnp.abs(out_bf16 - ref)))

    print("KERNEL_OK")
</pallas_src>

<mosaic_0001>
module attributes {stable_mosaic.version = 11 : i64} {
  func.func @kernel(%arg0: i32, %arg1: i32, %arg2: memref<1x4x326xf32, #tpu.memory_space<vmem>>, %arg3: memref<9x8x4xf32, #tpu.memory_space<vmem>>, %arg4: memref<8x1xf32, #tpu.memory_space<vmem>>, %arg5: memref<1x288xf32, #tpu.memory_space<vmem>>, %arg6: memref<1x8x288xf32, #tpu.memory_space<vmem>>) attributes {dimension_semantics = [#tpu.dimension_semantics<parallel>, #tpu.dimension_semantics<parallel>], iteration_bounds = array<i64: 2, 1>, scalar_prefetch = 0 : i64, scratch_operands = 0 : i64, tpu.core_type = #tpu.core_type<tc>, window_params = [{transform_indices = @transform_0, window_bounds = array<i64: 1, 4, 326>}, {transform_indices = @transform_1, window_bounds = array<i64: 9, 8, 4>}, {transform_indices = @transform_2, window_bounds = array<i64: 8, 1>}, {pipeline_mode = #tpu.pipeline_mode<synchronous>, transform_indices = @transform_3, window_bounds = array<i64: 1, 288>}, {transform_indices = @transform_4, window_bounds = array<i64: 1, 8, 288>}]} {
    %cst = arith.constant 0.000000e+00 : f32
    %0 = vector.broadcast %cst : f32 to vector<8x288xf32>
    %c0 = arith.constant 0 : index
    %c0_0 = arith.constant 0 : index
    %c0_1 = arith.constant 0 : index
    %1 = vector.load %arg2[%c0, %c0_0, %c0_1] : memref<1x4x326xf32, #tpu.memory_space<vmem>>, vector<1x4x288xf32>
    %2 = vector.shape_cast %1 : vector<1x4x288xf32> to vector<4x288xf32>
    %c0_2 = arith.constant 0 : index
    %c0_3 = arith.constant 0 : index
    %c0_4 = arith.constant 0 : index
    %3 = vector.load %arg3[%c0_2, %c0_3, %c0_4] : memref<9x8x4xf32, #tpu.memory_space<vmem>>, vector<1x8x4xf32>
    %4 = vector.shape_cast %3 : vector<1x8x4xf32> to vector<8x4xf32>
    %cst_5 = arith.constant dense<0.000000e+00> : vector<8x288xf32>
    %5 = tpu.matmul %4, %2, %cst_5 {dimension_numbers = #tpu.dot_dimension_numbers<[1], [0], [0], [1], [0, 0, 1, 1], [], []>} : vector<8x4xf32>, vector<4x288xf32>, vector<8x288xf32> -> vector<8x288xf32>
    %6 = arith.addf %0, %5 : vector<8x288xf32>
    %c0_6 = arith.constant 0 : index
    %c0_7 = arith.constant 0 : index
    %c1 = arith.constant 1 : index
    %7 = vector.load %arg2[%c0_6, %c0_7, %c1] : memref<1x4x326xf32, #tpu.memory_space<vmem>>, vector<1x4x288xf32>
    %8 = vector.shape_cast %7 : vector<1x4x288xf32> to vector<4x288xf32>
    %c1_8 = arith.constant 1 : index
    %c0_9 = arith.constant 0 : index
    %c0_10 = arith.constant 0 : index
    %9 = vector.load %arg3[%c1_8, %c0_9, %c0_10] : memref<9x8x4xf32, #tpu.memory_space<vmem>>, vector<1x8x4xf32>
    %10 = vector.shape_cast %9 : vector<1x8x4xf32> to vector<8x4xf32>
    %cst_11 = arith.constant dense<0.000000e+00> : vector<8x288xf32>
    %11 = tpu.matmul %10, %8, %cst_11 {dimension_numbers = #tpu.dot_dimension_numbers<[1], [0], [0], [1], [0, 0, 1, 1], [], []>} : vector<8x4xf32>, vector<4x288xf32>, vector<8x288xf32> -> vector<8x288xf32>
    %12 = arith.addf %6, %11 : vector<8x288xf32>
    %c0_12 = arith.constant 0 : index
    %c0_13 = arith.constant 0 : index
    %c2 = arith.constant 2 : index
    %13 = vector.load %arg2[%c0_12, %c0_13, %c2] : memref<1x4x326xf32, #tpu.memory_space<vmem>>, vector<1x4x288xf32>
    %14 = vector.shape_cast %13 : vector<1x4x288xf32> to vector<4x288xf32>
    %c2_14 = arith.constant 2 : index
    %c0_15 = arith.constant 0 : index
    %c0_16 = arith.constant 0 : index
    %15 = vector.load %arg3[%c2_14, %c0_15, %c0_16] : memref<9x8x4xf32, #tpu.memory_space<vmem>>, vector<1x8x4xf32>
    %16 = vector.shape_cast %15 : vector<1x8x4xf32> to vector<8x4xf32>
    %cst_17 = arith.constant dense<0.000000e+00> : vector<8x288xf32>
    %17 = tpu.matmul %16, %14, %cst_17 {dimension_numbers = #tpu.dot_dimension_numbers<[1], [0], [0], [1], [0, 0, 1, 1], [], []>} : vector<8x4xf32>, vector<4x288xf32>, vector<8x288xf32> -> vector<8x288xf32>
    %18 = arith.addf %12, %17 : vector<8x288xf32>
    %c0_18 = arith.constant 0 : index
    %c0_19 = arith.constant 0 : index
    %c18 = arith.constant 18 : index
    %19 = vector.load %arg2[%c0_18, %c0_19, %c18] : memref<1x4x326xf32, #tpu.memory_space<vmem>>, vector<1x4x288xf32>
    %20 = vector.shape_cast %19 : vector<1x4x288xf32> to vector<4x288xf32>
    %c3 = arith.constant 3 : index
    %c0_20 = arith.constant 0 : index
    %c0_21 = arith.constant 0 : index
    %21 = vector.load %arg3[%c3, %c0_20, %c0_21] : memref<9x8x4xf32, #tpu.memory_space<vmem>>, vector<1x8x4xf32>
    %22 = vector.shape_cast %21 : vector<1x8x4xf32> to vector<8x4xf32>
    %cst_22 = arith.constant dense<0.000000e+00> : vector<8x288xf32>
    %23 = tpu.matmul %22, %20, %cst_22 {dimension_numbers = #tpu.dot_dimension_numbers<[1], [0], [0], [1], [0, 0, 1, 1], [], []>} : vector<8x4xf32>, vector<4x288xf32>, vector<8x288xf32> -> vector<8x288xf32>
    %24 = arith.addf %18, %23 : vector<8x288xf32>
    %c0_23 = arith.constant 0 : index
    %c0_24 = arith.constant 0 : index
    %c19 = arith.constant 19 : index
    %25 = vector.load %arg2[%c0_23, %c0_24, %c19] : memref<1x4x326xf32, #tpu.memory_space<vmem>>, vector<1x4x288xf32>
    %26 = vector.shape_cast %25 : vector<1x4x288xf32> to vector<4x288xf32>
    %c4 = arith.constant 4 : index
    %c0_25 = arith.constant 0 : index
    %c0_26 = arith.constant 0 : index
    %27 = vector.load %arg3[%c4, %c0_25, %c0_26] : memref<9x8x4xf32, #tpu.memory_space<vmem>>, vector<1x8x4xf32>
    %28 = vector.shape_cast %27 : vector<1x8x4xf32> to vector<8x4xf32>
    %cst_27 = arith.constant dense<0.000000e+00> : vector<8x288xf32>
    %29 = tpu.matmul %28, %26, %cst_27 {dimension_numbers = #tpu.dot_dimension_numbers<[1], [0], [0], [1], [0, 0, 1, 1], [], []>} : vector<8x4xf32>, vector<4x288xf32>, vector<8x288xf32> -> vector<8x288xf32>
    %30 = arith.addf %24, %29 : vector<8x288xf32>
    %c0_28 = arith.constant 0 : index
    %c0_29 = arith.constant 0 : index
    %c20 = arith.constant 20 : index
    %31 = vector.load %arg2[%c0_28, %c0_29, %c20] : memref<1x4x326xf32, #tpu.memory_space<vmem>>, vector<1x4x288xf32>
    %32 = vector.shape_cast %31 : vector<1x4x288xf32> to vector<4x288xf32>
    %c5 = arith.constant 5 : index
    %c0_30 = arith.constant 0 : index
    %c0_31 = arith.constant 0 : index
    %33 = vector.load %arg3[%c5, %c0_30, %c0_31] : memref<9x8x4xf32, #tpu.memory_space<vmem>>, vector<1x8x4xf32>
    %34 = vector.shape_cast %33 : vector<1x8x4xf32> to vector<8x4xf32>
    %cst_32 = arith.constant dense<0.000000e+00> : vector<8x288xf32>
    %35 = tpu.matmul %34, %32, %cst_32 {dimension_numbers = #tpu.dot_dimension_numbers<[1], [0], [0], [1], [0, 0, 1, 1], [], []>} : vector<8x4xf32>, vector<4x288xf32>, vector<8x288xf32> -> vector<8x288xf32>
    %36 = arith.addf %30, %35 : vector<8x288xf32>
    %c0_33 = arith.constant 0 : index
    %c0_34 = arith.constant 0 : index
    %c36 = arith.constant 36 : index
    %37 = vector.load %arg2[%c0_33, %c0_34, %c36] : memref<1x4x326xf32, #tpu.memory_space<vmem>>, vector<1x4x288xf32>
    %38 = vector.shape_cast %37 : vector<1x4x288xf32> to vector<4x288xf32>
    %c6 = arith.constant 6 : index
    %c0_35 = arith.constant 0 : index
    %c0_36 = arith.constant 0 : index
    %39 = vector.load %arg3[%c6, %c0_35, %c0_36] : memref<9x8x4xf32, #tpu.memory_space<vmem>>, vector<1x8x4xf32>
    %40 = vector.shape_cast %39 : vector<1x8x4xf32> to vector<8x4xf32>
    %cst_37 = arith.constant dense<0.000000e+00> : vector<8x288xf32>
    %41 = tpu.matmul %40, %38, %cst_37 {dimension_numbers = #tpu.dot_dimension_numbers<[1], [0], [0], [1], [0, 0, 1, 1], [], []>} : vector<8x4xf32>, vector<4x288xf32>, vector<8x288xf32> -> vector<8x288xf32>
    %42 = arith.addf %36, %41 : vector<8x288xf32>
    %c0_38 = arith.constant 0 : index
    %c0_39 = arith.constant 0 : index
    %c37 = arith.constant 37 : index
    %43 = vector.load %arg2[%c0_38, %c0_39, %c37] : memref<1x4x326xf32, #tpu.memory_space<vmem>>, vector<1x4x288xf32>
    %44 = vector.shape_cast %43 : vector<1x4x288xf32> to vector<4x288xf32>
    %c7 = arith.constant 7 : index
    %c0_40 = arith.constant 0 : index
    %c0_41 = arith.constant 0 : index
    %45 = vector.load %arg3[%c7, %c0_40, %c0_41] : memref<9x8x4xf32, #tpu.memory_space<vmem>>, vector<1x8x4xf32>
    %46 = vector.shape_cast %45 : vector<1x8x4xf32> to vector<8x4xf32>
    %cst_42 = arith.constant dense<0.000000e+00> : vector<8x288xf32>
    %47 = tpu.matmul %46, %44, %cst_42 {dimension_numbers = #tpu.dot_dimension_numbers<[1], [0], [0], [1], [0, 0, 1, 1], [], []>} : vector<8x4xf32>, vector<4x288xf32>, vector<8x288xf32> -> vector<8x288xf32>
    %48 = arith.addf %42, %47 : vector<8x288xf32>
    %c0_43 = arith.constant 0 : index
    %c0_44 = arith.constant 0 : index
    %c38 = arith.constant 38 : index
    %49 = vector.load %arg2[%c0_43, %c0_44, %c38] : memref<1x4x326xf32, #tpu.memory_space<vmem>>, vector<1x4x288xf32>
    %50 = vector.shape_cast %49 : vector<1x4x288xf32> to vector<4x288xf32>
    %c8 = arith.constant 8 : index
    %c0_45 = arith.constant 0 : index
    %c0_46 = arith.constant 0 : index
    %51 = vector.load %arg3[%c8, %c0_45, %c0_46] : memref<9x8x4xf32, #tpu.memory_space<vmem>>, vector<1x8x4xf32>
    %52 = vector.shape_cast %51 : vector<1x8x4xf32> to vector<8x4xf32>
    %cst_47 = arith.constant dense<0.000000e+00> : vector<8x288xf32>
    %53 = tpu.matmul %52, %50, %cst_47 {dimension_numbers = #tpu.dot_dimension_numbers<[1], [0], [0], [1], [0, 0, 1, 1], [], []>} : vector<8x4xf32>, vector<4x288xf32>, vector<8x288xf32> -> vector<8x288xf32>
    %54 = arith.addf %48, %53 : vector<8x288xf32>
    %c0_48 = arith.constant 0 : index
    %c0_49 = arith.constant 0 : index
    %55 = vector.load %arg4[%c0_48, %c0_49] : memref<8x1xf32, #tpu.memory_space<vmem>>, vector<8x1xf32>
    %56 = vector.broadcast %55 : vector<8x1xf32> to vector<8x288xf32>
    %57 = arith.addf %54, %56 : vector<8x288xf32>
    %c0_50 = arith.constant 0 : index
    %c0_51 = arith.constant 0 : index
    %58 = vector.load %arg5[%c0_50, %c0_51] : memref<1x288xf32, #tpu.memory_space<vmem>>, vector<1x288xf32>
    %59 = vector.broadcast %58 : vector<1x288xf32> to vector<8x288xf32>
    %60 = arith.mulf %57, %59 : vector<8x288xf32>
    %cst_52 = arith.constant dense<0.000000e+00> : vector<8xf32>
    %61 = vector.multi_reduction <add>, %60, %cst_52 [1] : vector<8x288xf32> to vector<8xf32>
    %62 = vector.shape_cast %61 : vector<8xf32> to vector<8x1xf32>
    %63 = arith.mulf %60, %57 : vector<8x288xf32>
    %cst_53 = arith.constant dense<0.000000e+00> : vector<8xf32>
    %64 = vector.multi_reduction <add>, %63, %cst_53 [1] : vector<8x288xf32> to vector<8xf32>
    %65 = vector.shape_cast %64 : vector<8xf32> to vector<8x1xf32>
    %cst_54 = arith.constant 3.906250e-03 : f32
    %66 = vector.broadcast %cst_54 : f32 to vector<8x1xf32>
    %67 = arith.mulf %62, %66 : vector<8x1xf32>
    %cst_55 = arith.constant 3.906250e-03 : f32
    %68 = vector.broadcast %cst_55 : f32 to vector<8x1xf32>
    %69 = arith.mulf %65, %68 : vector<8x1xf32>
    %70 = arith.mulf %67, %67 : vector<8x1xf32>
    %71 = arith.subf %69, %70 : vector<8x1xf32>
    %72 = vector.broadcast %67 : vector<8x1xf32> to vector<8x288xf32>
    %73 = arith.subf %57, %72 : vector<8x288xf32>
    %cst_56 = arith.constant 9.99999974E-6 : f32
    %74 = vector.broadcast %cst_56 : f32 to vector<8x1xf32>
    %75 = arith.addf %71, %74 : vector<8x1xf32>
    %76 = math.rsqrt %75 : vector<8x1xf32>
    %77 = vector.broadcast %76 : vector<8x1xf32> to vector<8x288xf32>
    %78 = arith.mulf %73, %77 : vector<8x288xf32>
    %cst_57 = arith.constant 0.000000e+00 : f32
    %79 = vector.broadcast %cst_57 : f32 to vector<8x288xf32>
    %80 = arith.maximumf %78, %79 : vector<8x288xf32>
    %c0_58 = arith.constant 0 : index
    %c0_59 = arith.constant 0 : index
    %c0_60 = arith.constant 0 : index
    %81 = vector.load %arg6[%c0_58, %c0_59, %c0_60] : memref<1x8x288xf32, #tpu.memory_space<vmem>>, vector<1x8x288xf32>
    %82 = vector.shape_cast %81 : vector<1x8x288xf32> to vector<8x288xf32>
    %83 = vector.shape_cast %80 : vector<8x288xf32> to vector<1x8x288xf32>
    tpu.vector_store %arg6[%c0_58, %c0_59, %c0_60], %83 {strides = array<i32>} : memref<1x8x288xf32, #tpu.memory_space<vmem>>, vector<1x8x288xf32>,
    return
  }
  func.func @transform_0(%arg0: i32, %arg1: i32) -> (i32, i32, i32) {
    %c0_i32 = arith.constant 0 : i32
    %c0_i32_0 = arith.constant 0 : i32
    %c0_i32_1 = arith.constant 0 : i32
    return %arg0, %c0_i32, %c0_i32_0 : i32, i32, i32
  }
  func.func @transform_1(%arg0: i32, %arg1: i32) -> (i32, i32, i32) {
    %c0_i32 = arith.constant 0 : i32
    %c0_i32_0 = arith.constant 0 : i32
    %c0_i32_1 = arith.constant 0 : i32
    return %c0_i32, %arg1, %c0_i32_0 : i32, i32, i32
  }
  func.func @transform_2(%arg0: i32, %arg1: i32) -> (i32, i32) {
    %c0_i32 = arith.constant 0 : i32
    %c0_i32_0 = arith.constant 0 : i32
    return %arg1, %c0_i32 : i32, i32
  }
  func.func @transform_3(%arg0: i32, %arg1: i32) -> (i32, i32) {
    %c0_i32 = arith.constant 0 : i32
    %c0_i32_0 = arith.constant 0 : i32
    %c0_i32_1 = arith.constant 0 : i32
    return %c0_i32, %c0_i32_0 : i32, i32
  }
  func.func @transform_4(%arg0: i32, %arg1: i32) -> (i32, i32, i32) {
    %c0_i32 = arith.constant 0 : i32
    %c0_i32_0 = arith.constant 0 : i32
    return %arg0, %arg1, %c0_i32 : i32, i32, i32
  }
}

</mosaic_0001>

<bundles_post_ra>
// kernel: tpu_custom_call.1
= control target key start
LH: loop header
LB: loop body
LE: loop exit
PB: predicated region body
PF: predicated region fallthrough
CT: control target
= control target key end

     0   :  { %9 = vsyncpa [#allocation3], 0  ;;  %s2524_s0 = inlined_call_operand.vmem [shape: f32[2,4,326], index: 0, kind: input, shape index: {}]   ;;  %s2525_s1 = inlined_call_operand.vmem [shape: f32[9,8,4], index: 1, kind: input, shape index: {}]   ;;  %s2526_s2 = inlined_call_operand.vmem [shape: f32[8,1], index: 2, kind: input, shape index: {}]   ;;  %s2527_s3 = inlined_call_operand.vmem [shape: f32[1,288], index: 3, kind: input, shape index: {}]   ;;  %s2528_s4 = inlined_call_operand.hbm [shape: f32[2,8,288], index: 4, kind: output, shape index: {}]  }
   0x1   :  { %11 = vsyncpa [#allocation3 + $0x1], 0  ;;  %s2257_s15 = smov 0   ;;  %s2259_s16 = smov 0  }
   0x2   :  { %s2261_s17 = smov 0   ;;  %s2263_s18 = smov 0  }
   0x3   :  { %s2265_s19 = smov 0   ;;  %s2267_s20 = smov 0  }
   0x4 LB: > { %s1924_s21 = sadd.s32 4294967295, %s2218_s20   ;;  %s1925_s22 = sadd.s32 4294967294, %s2218_s20   ;;  %s2218_s20 = sphi %s2267_s20, %s17_s20   ;;  %s2214_s19 = sphi %s2265_s19, %s2535_s19   ;;  %s2210_s18 = sphi %s2263_s18, %s2534_s18   ;;  %s2206_s17 = sphi %s2261_s17, %s2533_s17   ;;  %s2202_s16 = sphi %s2259_s16, %s2532_s16   ;;  %s2198_s15 = sphi %s2257_s15, %s2531_s15  }
   0x5   : > { %s29_s23 = sadd.s32 1, %s2214_s19  ;;  %s137_s24 = sadd.s32 1, %s2206_s17 }
   0x6   : > { %p31_p0 = scmp.ge.s32.totalorder %s29_s23, 2  ;;  %p147_p1 = scmp.ne.s32.totalorder %s2206_s17, %s2202_s16 }
   0x7   : > { %p148_p2 = scmp.eq.s32.totalorder %s1924_s21, 1  ;;  %p153_p3 = scmp.ne.s32.totalorder %s2202_s16, %s2198_s15 }
   0x8   : > { %s2537_s23 = smov (%p31_p0, %s29_s23), 0  ;;  %p154_p5 = scmp.eq.s32.totalorder %s1925_s22, 1 }
   0x9   : > { %p2297_p4 = por %p148_p2, %p147_p1  ;;  %s132_s26 = ssub.s32 %s2214_s19, %s2537_s23 }
   0xa   : > { %p1930_p6 = scmp.ge.s32.totalorder %s2218_s20, 1  ;;  %p135_p7 = scmp.eq.s32.totalorder %s132_s26, 0 }
   0xb   : > { %p2304_p8 = por %p154_p5, %p153_p3  ;;  %p197_p9 = scmp.lt.s32.totalorder %s2218_s20, 3 }
   0xc   : > { %s2310_s28 = scalar_select %p135_p7, %s2206_s17, %s137_s24  }
   0xd   : > { %p198_p10 = pnand %p1930_p6, %p197_p9 }
   0xe   : > { %p231_p11 = scmp.lt.s32.totalorder (!%p198_p10), %s2210_s18, 1  ;;  %v2220_v0 = vmov (!%p198_p10), 0.0   ;;  %vm2221_vm0 = vmmov (!%p198_p10), 0   ;;  %s2222_s8 = smov (!%p198_p10), 127   ;;  %v1746_v11 = vld [vmem:[%s2526_s2] sm:$0xff] (!%p198_p10)  ;;  %v2230_v12 = vmov (!%p198_p10), 0  }
   0xf   : > { %201 = sbr.rel (%p198_p10) target bundleno = 617 (0x269), region = 36  ;;  %2006 = vmatprep.subr.mxu1 (!%p198_p10), %v2220_v0  ;;  %336 = vmatprep.mubr.f32.mxu0 (!%p198_p10), %v2220_v0  ;;  %s2223_s9 = smov (!%p198_p10), 126   ;;  %vm265_vm1 = vcmask (!%p198_p10), 1043456   ;;  %vm258_vm2 = vcmask (!%p198_p10), 1039360   ;;  %v1932_v18 = vld [vmem:[%s2525_s1 + $0x8] sm:$0xff] (!%p198_p10)  ;;  %vm261_vm3 = vcmask (!%p198_p10), 31744  }
  0x10   : > { %2008 = vmatprep.mubr.msk.f32.mxu1 (!%p198_p10), %vm2221_vm0, %v2220_v0  ;;  %s2224_s10 = smov (!%p198_p10), 110   ;;  %s2225_s11 = smov (!%p198_p10), 109   ;;  %2136 = vset.pattern.permute.xlu0 (!%p198_p10), %v2230_v12  ;;  %vm576_vm4 = vcmask (!%p198_p10), 1031168   ;;  %v246_v24 = vld [vmem:[%s2525_s1] sm:$0xff] (!%p198_p10)  ;;  %vm745_vm5 = vcmask (!%p198_p10), 900096   ;;  %v1943_v29 = vld [vmem:[%s2525_s1 + $0x10] sm:$0xff] (!%p198_p10) }
  0x11   : > { %s2226_s12 = smov (!%p198_p10), 108   ;;  %s2227_s13 = smov (!%p198_p10), 92   ;;  %v1949_v31 = vld [vmem:[%s2525_s1 + $0x18] sm:$0xff] (!%p198_p10)  ;;  %vm914_vm6 = vcmask (!%p198_p10), 891904   ;;  %v1955_v34 = vld [vmem:[%s2525_s1 + $0x20] sm:$0xff] (!%p198_p10)  ;;  %v1961_v39 = vld [vmem:[%s2525_s1 + $0x28] sm:$0xff] (!%p198_p10) }
  0x12   : > { %s2228_s14 = smov (!%p198_p10), 91   ;;  %s2229_s21 = smov (!%p198_p10), 90   ;;  %vm1083_vm7 = vcmask (!%p198_p10), 883712   ;;  %v1967_v46 = vld [vmem:[%s2525_s1 + $0x30] sm:$0xff] (!%p198_p10)  ;;  %vm1252_vm8 = vcmask (!%p198_p10), 752640   ;;  %v1973_v49 = vld [vmem:[%s2525_s1 + $0x38] sm:$0xff] (!%p198_p10) }
  0x13   : > { %v1979_v53 = vld [vmem:[%s2525_s1 + $0x40] sm:$0xff] (!%p198_p10)  ;;  %vm1421_vm9 = vcmask (!%p198_p10), 744448   ;;  %vm1590_vm10 = vcmask (!%p198_p10), 736256   ;;  %vm1776_vm11 = vcmask (!%p198_p10), 261120   ;;  %s228_s6 = sand.u32 (!%p198_p10), 1, %s2202_s16  }
  0x16   : > { %s232_s29 = scalar_select %p231_p11, %s2210_s18, 1 }
  0x18   : > { %s2068_s30 = smul.u32 12, %s232_s29 }
  0x1a   : > { %s2319_s7 = scalar_lea.vmem %s2524_s0, %s2068_s30 }
  0x1b   : > { %v2324_v1 = vld [vmem:[%s2319_s7] sm:$0xff]  ;;  %v2330_v3 = vld [vmem:[%s2319_s7 + $0x8] sm:$0xf] }
  0x1c   : > { %252 = vrot.lane.b32.xlu1 %v2324_v1, %s2222_s8  ;;  %v251_v2 = vcombine.high %v2324_v1, %v2324_v1  ;;  %v564_v4 = vld [vmem:[%s2319_s7 + $0x8] sm:$0xf] }
  0x1d   : > { %v733_v5 = vld [vmem:[%s2319_s7 + $0x8] sm:$0xf] }
  0x1e   : > { %254 = vrot.lane.b32.xlu0 %v251_v2, %s2222_s8  ;;  %v902_v6 = vld [vmem:[%s2319_s7 + $0x8] sm:$0xf] }
  0x1f   : > { %v1071_v7 = vld [vmem:[%s2319_s7 + $0x8] sm:$0xf] }
  0x20   : > { %572 = vrot.lane.b32.xlu1 %v251_v2, %s2223_s9  ;;  %v1240_v8 = vld [vmem:[%s2319_s7 + $0x8] sm:$0xf] }
  0x21   : > { %v1409_v9 = vld [vmem:[%s2319_s7 + $0x8] sm:$0xf] }
  0x22   : > { %256 = vrot.lane.b32.xlu0 %v2330_v3, %s2222_s8  ;;  %v1578_v10 = vld [vmem:[%s2319_s7 + $0x8] sm:$0xf]  ;;  %s2067_s7 = smul.u32 24, %s228_s6 }
  0x23   : > { %s2069_s8 = smul.u32 384, %s2210_s18  ;;  %s1808_s18 = scalar_lea.sflag [#allocation3], %s228_s6 }
  0x24   : > { %570 = vrot.lane.b32.xlu1 %v2324_v1, %s2223_s9 }
  0x26   : > { %574 = vrot.lane.b32.xlu0 %v564_v4, %s2223_s9  ;;  %s230_s9 = scalar_lea.vmem [#allocation2], %s2067_s7 }
  0x28   : > { %743 = vrot.lane.b32.xlu1 %v733_v5, %s2224_s10 }
  0x2a   : > { %741 = vrot.lane.b32.xlu0 %v251_v2, %s2224_s10 }
  0x2c   : > { %910 = vrot.lane.b32.xlu1 %v251_v2, %s2225_s11 }
  0x2e   : > { %739 = vrot.lane.b32.xlu0 %v2324_v1, %s2224_s10  ;;  %s1824_s10 = sshll.u32 %s230_s9, 4  ;;  %s2478_s10 = int_to_ptr.vmem [resolvable:$true] %s1824_s10 }
  0x30   : > { %908 = vrot.lane.b32.xlu1 %v2324_v1, %s2225_s11 }
  0x32   : > { %912 = vrot.lane.b32.xlu0 %v902_v6, %s2225_s11 }
  0x34   : > { %1081 = vrot.lane.b32.xlu1 %v1071_v7, %s2226_s12 }
  0x36   : > { %1079 = vrot.lane.b32.xlu0 %v251_v2, %s2226_s12 }
  0x38   : > { %1248 = vrot.lane.b32.xlu1 %v251_v2, %s2227_s13 }
  0x3a   : > { %1077 = vrot.lane.b32.xlu0 %v2324_v1, %s2226_s12 }
  0x3c   : > { %1246 = vrot.lane.b32.xlu1 %v2324_v1, %s2227_s13 }
  0x3e   : > { %1250 = vrot.lane.b32.xlu0 %v1240_v8, %s2227_s13  ;;  %s2476_s13 = scalar_lea.hbm %s2528_s4, %s2069_s8 }
  0x40   : > { %1419 = vrot.lane.b32.xlu1 %v1409_v9, %s2228_s14 }
  0x42   : > { %1417 = vrot.lane.b32.xlu0 %v251_v2, %s2228_s14 }
  0x44   : > { %1586 = vrot.lane.b32.xlu1 %v251_v2, %s2229_s21 }
  0x46   : > { %1415 = vrot.lane.b32.xlu0 %v2324_v1, %s2228_s14  ;;  %s2140_s14 = scalar_lea.vmem %s2478_s10, 384 }
  0x47   : > { %p2141_p12 = scmp.ne.s32.totalorder %s2478_s10, %s2140_s14 }
  0x48   : > { %1584 = vrot.lane.b32.xlu1 %v2324_v1, %s2229_s21 }
  0x49   : > { %p2142_p13 = pnand %p2141_p12, %p2297_p4 }
  0x4a   : > { %1588 = vrot.lane.b32.xlu0 %v1578_v10, %s2229_s21  ;;  %s2231_s21 = smov [#allocation2]  }
  0x4b   : > { %p2143_p0 = pneg %p2142_p13  ;;  %s2144_s22 = sshll.u32 %s2231_s21, 4  ;;  %s2145_s22 = int_to_ptr.vmem [resolvable:$false] %s2144_s22 }
  0x4c   : > { %s2146_s24 = scalar_lea.vmem %s2145_s22, 768  ;;  %p2147_p1 = scmp.lt.s32.totalorder %s2478_s10, %s2145_s22 }
  0x4d   : > { %p2148_p2 = scmp.lt.s32.totalorder %s2146_s24, %s2140_s14 }
  0x4e   : > { %1749 = vperm.xlu0 %2136, %v1746_v11  }
  0x4f   : > { %p2149_p3 = por %p2148_p2, %p2147_p1 }
  0x51   : > { %p2150_p5 = pnand %p2149_p3, %p2143_p0 }
  0x8e   : > { %v253_v13 = vpop.permute.xlu1 %252 }
  0x90   : > { %v255_v14 = vpop.permute.xlu0 %254 }
  0x91   : > { %v259_v19 = vsel %vm258_vm2, %v253_v13, %v255_v14 }
  0x92   : > { %v573_v15 = vpop.permute.xlu1 %572 }
  0x94   : > { %v257_v16 = vpop.permute.xlu0 %256 }
  0x95   : > { %2007 = vmatpush3.msk.msra.mxu1 %vm265_vm1, %v257_v16  ;;  %v260_v17 = vsel %vm258_vm2, %v255_v14, %v257_v16 }
  0x96   : > { %1933 = vmatprep.subr.msk.mxu0 %vm265_vm1, %v260_v17  ;;  %v571_v20 = vpop.permute.xlu1 %570  ;;  %2009 = vmatmul.mubr.msk.f32.vlgmr.msra.gmra.mrb[0].mxu1 %vm261_vm3, %v1932_v18 }
  0x97   : > { %1934 = vmatpush1.msk.msra.mxu0 %vm265_vm1, %v259_v19  ;;  %2011 = vmatprep.subr.mxu1 %v2220_v0  ;;  %v577_v26 = vsel %vm576_vm4, %v571_v20, %v573_v15 }
  0x98   : > { %1935 = vmatmul.mubr.msk.f32.vlgmr.msra.gmra.mrb[0].mxu0 %vm261_vm3, %v1932_v18  ;;  %1938 = vmatprep.subr.msk.mxu0 %vm265_vm1, %v251_v2  ;;  %v575_v21 = vpop.permute.xlu0 %574 }
  0x99   : > { %1939 = vmatpush1.msk.msra.mxu0 %vm265_vm1, %v2324_v1  ;;  %v578_v22 = vsel %vm576_vm4, %v573_v15, %v575_v21  ;;  %2012 = vmatpush3.msk.msra.mxu1 %vm265_vm1, %v2330_v3 }
  0x9a   : > { %1944 = vmatprep.subr.msk.mxu0 %vm265_vm1, %v578_v22  ;;  %2013 = vmatprep.mubr.msk.f32.mxu1 %vm2221_vm0, %v2220_v0  ;;  %v744_v23 = vpop.permute.xlu1 %743 }
  0x9b   : > { %2016 = vmatprep.subr.mxu1 %v2220_v0  ;;  %486 = vmatprep.mubr.f32.mxu0 %v2220_v0 }
  0x9c   : > { %2014 = vmatmul.mubr.msk.f32.vlgmr.msra.gmra.mrb[2].mxu1 %vm261_vm3, %v246_v24  ;;  %v742_v25 = vpop.permute.xlu0 %741 }
  0x9d   : > { %2017 = vmatpush3.msk.msra.mxu1 %vm265_vm1, %v575_v21  ;;  %2018 = vmatprep.mubr.msk.f32.mxu1 %vm2221_vm0, %v2220_v0  ;;  %v747_v28 = vsel %vm745_vm5, %v742_v25, %v744_v23 }
  0x9e   : > { %2021 = vmatprep.subr.mxu1 %v2220_v0  ;;  %v911_v27 = vpop.permute.xlu1 %910 }
  0xa0   : > { %1940 = vmatmul.mubr.msk.f32.vlgmr.msra.gmra.mrb[0].mxu0 %vm261_vm3, %v246_v24  ;;  %v740_v30 = vpop.permute.xlu0 %739  ;;  %2019 = vmatmul.mubr.msk.f32.vlgmr.msra.gmra.mrb[4].mxu1 %vm261_vm3, %v1943_v29  ;;  %v1757_v24 = vlaneseq }
  0xa1   : > { %1945 = vmatpush1.msk.msra.mxu0 %vm265_vm1, %v577_v26  ;;  %652 = vmatprep.mubr.f32.mxu0 %v2220_v0  ;;  %v746_v35 = vsel %vm745_vm5, %v740_v30, %v742_v25 }
  0xa2   : > { %1950 = vmatprep.subr.msk.mxu0 %vm265_vm1, %v747_v28  ;;  %2022 = vmatpush3.msk.msra.mxu1 %vm265_vm1, %v744_v23  ;;  %v909_v32 = vpop.permute.xlu1 %908  ;;  %v1758_v25 = vshrl.u32 %v1757_v24, 7  ;;  %v1755_v28 = vld [vmem:[%s2527_s3] sm:$0x7] }
  0xa3   : > { %2023 = vmatprep.mubr.msk.f32.mxu1 %vm2221_vm0, %v2220_v0  ;;  %2026 = vmatprep.subr.mxu1 %v2220_v0  ;;  %v915_v42 = vsel %vm914_vm6, %v909_v32, %v911_v27 }
  0xa4   : > { %v913_v33 = vpop.permute.xlu0 %912  ;;  %2024 = vmatmul.mubr.msk.f32.vlgmr.msra.gmra.mrb[6].mxu1 %vm261_vm3, %v1949_v31  ;;  %v1767_v26 = vsub.s32 2, %v1758_v25  ;;  %v1763_v30 = vsub.s32 1, %v1758_v25 }
  0xa5   : > { %2027 = vmatpush3.msk.msra.mxu1 %vm265_vm1, %v913_v33  ;;  %2028 = vmatprep.mubr.msk.f32.mxu1 %vm2221_vm0, %v2220_v0  ;;  %v916_v37 = vsel %vm914_vm6, %v911_v27, %v913_v33 }
  0xa6   : > { %v1082_v36 = vpop.permute.xlu1 %1081  ;;  %2031 = vmatprep.subr.mxu1 %v2220_v0  ;;  %v1768_v32 = vrot.slane %v1755_v28, %v1767_v26 }
  0xa8   : > { %1946 = vmatmul.mubr.msk.f32.vlgmr.msra.gmra.mrb[0].mxu0 %vm261_vm3, %v1943_v29  ;;  %v1080_v38 = vpop.permute.xlu0 %1079  ;;  %2029 = vmatmul.mubr.msk.f32.vlgmr.msra.gmra.mrb[8].mxu1 %vm261_vm3, %v1955_v34  ;;  %v1759_v29 = vsub.s32 0, %v1758_v25 }
  0xa9   : > { %1951 = vmatpush1.msk.msra.mxu0 %vm265_vm1, %v746_v35  ;;  %821 = vmatprep.mubr.f32.mxu0 %v2220_v0  ;;  %v1085_v44 = vsel %vm1083_vm7, %v1080_v38, %v1082_v36  ;;  %v1764_v35 = vrot.slane %v1755_v28, %v1763_v30 }
  0xaa   : > { %1956 = vmatprep.subr.msk.mxu0 %vm265_vm1, %v916_v37  ;;  %v1249_v40 = vpop.permute.xlu1 %1248  ;;  %2032 = vmatpush3.msk.msra.mxu1 %vm265_vm1, %v1082_v36  ;;  %v1760_v33 = vrot.slane %v1755_v28, %v1759_v29 }
  0xab   : > { %2033 = vmatprep.mubr.msk.f32.mxu1 %vm2221_vm0, %v2220_v0  ;;  %2036 = vmatprep.subr.mxu1 %v2220_v0 }
  0xac   : > { %v1078_v41 = vpop.permute.xlu0 %1077  ;;  %2034 = vmatmul.mubr.msk.f32.vlgmr.msra.gmra.mrb[10].mxu1 %vm261_vm3, %v1961_v39 }
  0xad   : > { %2038 = vmatprep.mubr.msk.f32.mxu1 %vm2221_vm0, %v2220_v0  ;;  %v1084_v50 = vsel %vm1083_vm7, %v1078_v41, %v1080_v38 }
  0xae   : > { %v1247_v43 = vpop.permute.xlu1 %1246 }
  0xaf   : > { %v1253_v55 = vsel %vm1252_vm8, %v1247_v43, %v1249_v40 }
  0xb0   : > { %1952 = vmatmul.mubr.msk.f32.vlgmr.msra.gmra.mrb[0].mxu0 %vm261_vm3, %v1949_v31  ;;  %v1251_v45 = vpop.permute.xlu0 %1250 }
  0xb1   : > { %1957 = vmatpush1.msk.msra.mxu0 %vm265_vm1, %v915_v42  ;;  %990 = vmatprep.mubr.f32.mxu0 %v2220_v0  ;;  %v1254_v51 = vsel %vm1252_vm8, %v1249_v40, %v1251_v45 }
  0xb2   : > { %1962 = vmatprep.subr.msk.mxu0 %vm265_vm1, %v1085_v44  ;;  %2037 = vmatpush3.msk.msra.mxu1 %vm265_vm1, %v1251_v45  ;;  %v1420_v47 = vpop.permute.xlu1 %1419 }
  0xb3   : > { %2039 = vmatmul.mubr.msk.f32.vlgmr.msra.gmra.mrb[12].mxu1 %vm261_vm3, %v1967_v46  ;;  %2041 = vmatprep.subr.mxu1 %v2220_v0 }
  0xb4   : > { %v1418_v48 = vpop.permute.xlu0 %1417  ;;  %2042 = vmatpush3.msk.msra.mxu1 %vm265_vm1, %v1420_v47  ;;  %2043 = vmatprep.mubr.msk.f32.mxu1 %vm2221_vm0, %v2220_v0 }
  0xb5   : > { %2046 = vmatprep.subr.mxu1 %v2220_v0  ;;  %v1423_v56 = vsel %vm1421_vm9, %v1418_v48, %v1420_v47 }
  0xb6   : > { %v1587_v57 = vpop.permute.xlu1 %1586 }
  0xb7   : > { %2044 = vmatmul.mubr.msk.f32.vlgmr.msra.gmra.mrb[14].mxu1 %vm261_vm3, %v1973_v49 }
  0xb8   : > { %1958 = vmatmul.mubr.msk.f32.vlgmr.msra.gmra.mrb[0].mxu0 %vm261_vm3, %v1955_v34  ;;  %v1416_v52 = vpop.permute.xlu0 %1415  ;;  %2048 = vmatprep.mubr.msk.f32.mxu1 %vm2221_vm0, %v2220_v0 }
  0xb9   : > { %1963 = vmatpush1.msk.msra.mxu0 %vm265_vm1, %v1084_v50  ;;  %1159 = vmatprep.mubr.f32.mxu0 %v2220_v0  ;;  %v1422_v58 = vsel %vm1421_vm9, %v1416_v52, %v1418_v48 }
  0xba   : > { %1968 = vmatprep.subr.msk.mxu0 %vm265_vm1, %v1254_v51  ;;  %v1585_v60 = vpop.permute.xlu1 %1584 }
  0xbb   : > { %v1591_v61 = vsel %vm1590_vm10, %v1585_v60, %v1587_v57 }
  0xbc   : > { %v1589_v54 = vpop.permute.xlu0 %1588 }
  0xbd   : > { %2047 = vmatpush3.msk.msra.mxu1 %vm265_vm1, %v1589_v54  ;;  %v1592_v59 = vsel %vm1590_vm10, %v1587_v57, %v1589_v54 }
  0xbe   : > { %2049 = vmatmul.mubr.msk.f32.vlgmr.msra.gmra.mrb[16].mxu1 %vm261_vm3, %v1979_v53 }
  0xc0   : > { %1964 = vmatmul.mubr.msk.f32.vlgmr.msra.gmra.mrb[0].mxu0 %vm261_vm3, %v1961_v39 }
  0xc1   : > { %1969 = vmatpush1.msk.msra.mxu0 %vm265_vm1, %v1253_v55  ;;  %1328 = vmatprep.mubr.f32.mxu0 %v2220_v0 }
  0xc2   : > { %1974 = vmatprep.subr.msk.mxu0 %vm265_vm1, %v1423_v56 }
  0xc8   : > { %1970 = vmatmul.mubr.msk.f32.vlgmr.msra.gmra.mrb[0].mxu0 %vm261_vm3, %v1967_v46 }
  0xc9   : > { %1975 = vmatpush1.msk.msra.mxu0 %vm265_vm1, %v1422_v58  ;;  %1497 = vmatprep.mubr.f32.mxu0 %v2220_v0 }
  0xca   : > { %1980 = vmatprep.subr.msk.mxu0 %vm265_vm1, %v1592_v59 }
  0xcd   : > { %v1750_v27 = vpop.permute.xlu0 %1749 }
  0xd0   : > { %1976 = vmatmul.mubr.msk.f32.vlgmr.msra.gmra.mrb[0].mxu0 %vm261_vm3, %v1973_v49 }
  0xd1   : > { %1981 = vmatpush1.msk.msra.mxu0 %vm265_vm1, %v1591_v61  ;;  %1666 = vmatprep.mubr.f32.mxu0 %v2220_v0 }
  0xd8   : > { %1982 = vmatmul.mubr.msk.f32.vlgmr.msra.gmra.mrb[0].mxu0 %vm261_vm3, %v1979_v53 }
 0x169   : > { %v409_v62 = vpop.f32.mrb[0].mxu1 }
 0x16a   : > { %v2010_v63 = vpop.f32.mrb[1].mxu1 }
 0x16f   : > { %v559_v1 = vpop.f32.mrb[2].mxu1 }
 0x170   : > { %v560_v2 = vadd.f32 %v559_v1, %v409_v62  ;;  %v2015_v3 = vpop.f32.mrb[3].mxu1 }
 0x173   : > { %v725_v4 = vpop.f32.mrb[4].mxu1 }
 0x174   : > { %v731_v5 = vadd.f32 %v725_v4, %v560_v2  ;;  %v2020_v6 = vpop.f32.mrb[5].mxu1 }
 0x177   : > { %v894_v7 = vpop.f32.mrb[6].mxu1 }
 0x178   : > { %v900_v8 = vadd.f32 %v894_v7, %v731_v5  ;;  %v2025_v9 = vpop.f32.mrb[7].mxu1 }
 0x17b   : > { %v1063_v10 = vpop.f32.mrb[8].mxu1 }
 0x17c   : > { %v1069_v11 = vadd.f32 %v1063_v10, %v900_v8  ;;  %v2030_v12 = vpop.f32.mrb[9].mxu1 }
 0x17f   : > { %v1232_v13 = vpop.f32.mrb[10].mxu1 }
 0x180   : > { %v1238_v14 = vadd.f32 %v1232_v13, %v1069_v11  ;;  %v2035_v15 = vpop.f32.mrb[11].mxu1 }
 0x186   : > { %v1401_v0 = vpop.f32.mrb[12].mxu1 }
 0x187   : > { %v1407_v16 = vadd.f32 %v1401_v0, %v1238_v14  ;;  %v2040_v17 = vpop.f32.mrb[13].mxu1 }
 0x18a   : > { %v1570_v18 = vpop.f32.mrb[14].mxu1 }
 0x18b   : > { %v1576_v19 = vadd.f32 %v1570_v18, %v1407_v16  ;;  %v2045_v20 = vpop.f32.mrb[15].mxu1 }
 0x191   : > { %v1739_v21 = vpop.f32.mrb[16].mxu1 }
 0x192   : > { %v1745_v22 = vadd.f32 %v1739_v21, %v1576_v19  ;;  %v2050_v23 = vpop.f32.mrb[17].mxu1 }
 0x194   : > { %v1754_v31 = vadd.f32 %v1750_v27, %v1745_v22 }
 0x196   : > { %v1774_v38 = vmul.f32 %v1768_v32, %v1754_v31 }
 0x198   : > { %v1783_v43 = vmul.f32 %v1774_v38, %v1754_v31  ;;  %v1777_v46 = vsel %vm1776_vm11, %v1774_v38, 0.0 }
 0x19a   : > { %v1785_v49 = vsel %vm1776_vm11, %v1783_v43, 0.0 }
 0x1ab   : > { %v1668_v34 = vpop.f32.mrb[0].mxu0 }
 0x1ac   : > { %v1752_v36 = vadd.f32 %v1750_v27, %v1668_v34  ;;  %v1670_v37 = vpop.f32.mrb[1].mxu0 }
 0x1ad   : > { %v1753_v39 = vadd.f32 %v1750_v27, %v1670_v37 }
 0x1ae   : > { %v1772_v40 = vmul.f32 %v1760_v33, %v1752_v36 }
 0x1af   : > { %v1773_v41 = vmul.f32 %v1764_v35, %v1753_v39 }
 0x1b0   : > { %v1781_v42 = vmul.f32 %v1772_v40, %v1752_v36 }
 0x1b1   : > { %v1782_v44 = vmul.f32 %v1773_v41, %v1753_v39  ;;  %v1775_v45 = vadd.f32 %v1773_v41, %v1772_v40 }
 0x1b3   : > { %v1778_v47 = vadd.f32 %v1777_v46, %v1775_v45  ;;  %v1784_v48 = vadd.f32 %v1782_v44, %v1781_v42 }
 0x1b5   : > { %1779 = vadd.xlane.f32.xlu1 %v1778_v47  ;;  %v1786_v50 = vadd.f32 %v1785_v49, %v1784_v48 }
 0x1b7   : > { %1787 = vadd.xlane.f32.xlu0 %v1786_v50 }
 0x242   : > { %v1780_v51 = vpop.xlane.xlu1 %1779 }
 0x243   : > { %v1789_v52 = vmul.f32 0.00390625, %v1780_v51 }
 0x244   : > { %v1788_v53 = vpop.xlane.xlu0 %1787 }
 0x245   : > { %v1790_v54 = vmul.f32 0.00390625, %v1788_v53  ;;  %v1791_v55 = vmul.f32 %v1789_v52, %v1789_v52  ;;  %v1793_v58 = vsub.f32 %v1752_v36, %v1789_v52  ;;  %v1794_v59 = vsub.f32 %v1753_v39, %v1789_v52 }
 0x246   : > { %v1795_v60 = vsub.f32 %v1754_v31, %v1789_v52 }
 0x247   : > { %v1792_v56 = vsub.f32 %v1790_v54, %v1791_v55 }
 0x249   : > { %v1796_v57 = vadd.f32 1e-05, %v1792_v56 }
 0x24b   : > { %2138 = vrsqrt.f32 %v1796_v57 }
 0x255   : > { %v2139_v61 = vpop.eup %2138 }
 0x256   : > { %v1798_v62 = vmul.f32 %v2139_v61, %v1793_v58  ;;  %v1799_v63 = vmul.f32 %v2139_v61, %v1794_v59  ;;  %v1800_v1 = vmul.f32 %v2139_v61, %v1795_v60 }
 0x258   : > { %v1801_v2 = vmax.f32 %v1798_v62, 0.0  ;;  %v1802_v3 = vmax.f32 %v1799_v63, 0.0  ;;  %v1803_v4 = vmax.f32 %v1800_v1, 0.0 }
 0x25a   : > { %1804 = vst [vmem:[%s230_s9] sm:$0xff] %v1801_v2  ;;  %1805 = vst [vmem:[%s230_s9 + $0x8] sm:$0xff] %v1802_v3 }
 0x25b   : > { %1806 = vst.msk [vmem:[%s230_s9 + $0x10] sm:$0xff] %vm1776_vm11, %v1803_v4 }
 0x25c   : > { %2153 = shalt.err (!%p2150_p5)
}
 0x25d   : > { %s2154_s26 = scalar_lea.hbm %s2476_s13, 384  ;;  %s2158_s5 = scalar_lea.hbm %s2528_s4, 768 }
 0x25e   : > { %p2155_p6 = scmp.ne.s32.totalorder %s2476_s13, %s2154_s26  ;;  %p2159_p10 = scmp.lt.u32.totalorder %s2476_s13, %s2528_s4 }
 0x25f   : > { %p2160_p11 = scmp.lt.u32.totalorder %s2158_s5, %s2154_s26  ;;  %p2162_p13 = scmp.lt.u32.totalorder %s2154_s26, %s2476_s13 }
 0x260   : > { %p2156_p7 = pnand %p2155_p6, %p2297_p4 }
 0x261   : > { %p2161_p12 = por %p2160_p11, %p2159_p10 }
 0x262   : > { %p2157_p9 = pneg %p2156_p7 }
 0x263   : > { %p2163_p0 = por %p2162_p13, %p2161_p12 }
 0x265   : > { %p2164_p1 = pnand %p2163_p0, %p2157_p9 }
 0x267   : > { %2167 = shalt.err (!%p2164_p1)
}
 0x268   : > { %2070 = dma.vmem_to_hbm [thread:$0]  (%p2297_p4), %s2478_s10, 384, %s2476_s13, %s1808_s18  }
 0x269 PF: > { %p2076_p2 = scmp.ge.s32.totalorder %s2218_s20, 2  ;;  %s1836_s8 = sand.u32 1, %s2198_s15  }
 0x26a   : > { %s1837_s9 = scalar_lea.sflag [#allocation3], %s1836_s8 }
 0x26b   : > { %p2073_p3 = pnand %p2076_p2, %p2304_p8 }
 0x26d   : > { %2193 = dma.done.wait (!%p2073_p3), %s1837_s9, 384  }
 0x26e   : > { %2195 = vsyncadd (!%p2073_p3), %s1837_s9, 4294966912  ;;  %s17_s20 = sadd.s32 1, %s2218_s20   ;;  %s2531_s15 = smov %s2202_s16 }
 0x26f   : > { %p14_p5 = scmp.ge.s32.totalorder %s17_s20, 4   ;;  %s2532_s16 = smov %s2206_s17 }
 0x270   : > { %s2533_s17 = smov %s2310_s28  ;;  %s2534_s18 = smov %s2214_s19 }
 0x271   : > { %s2535_s19 = smov %s2537_s23  ;;  %16 = sbr.rel (!%p14_p5) target bundleno = 4 (0x4), region = 85 }
 0x278   :  { %1842 = vsyncpa [#allocation3], 1 }
 0x279   :  { %1844 = vsyncpa [#allocation3 + $0x1], 1 }

</bundles_post_ra>
